<compile_context>
chip_gen: v6e
topology: v6e:2x2x1
jax: 0.10.0
libtpu: 0.0.40
codegen_flags: <defaults>
</compile_context>

<pallas_src>
from functools import partial

import jax
import jax.numpy as jnp
from jax.experimental import pallas as pl
from jax.experimental.pallas import tpu as pltpu


def _down_kernel(p_ref, w_ref, b_ref, o_ref):
    # p_ref: (1, K, tm)       patch columns (one column per output pixel)
    # w_ref: (1+Cout, K)      augmented weight (row 0 = avg-pool row), VMEM-resident
    # b_ref: (Cout, 1)        conv bias column
    # o_ref: (1, 1+Cout, tm)
    y = jnp.dot(w_ref[...], p_ref[0], preferred_element_type=jnp.float32)
    # Row 0 is the hard avg-pool skip (pass-through, no bias); rows 1.. get
    # bias + SiLU.  Two slab stores: no iota/compare/select and no wasted
    # sigmoid on the skip row.
    o_ref[0, 0:1, :] = y[0:1, :].astype(o_ref.dtype)
    yl = y[1:, :] + b_ref[...]
    o_ref[0, 1:, :] = (yl * jax.nn.sigmoid(yl)).astype(o_ref.dtype)


def _round_up(a, b):
    return (a + b - 1) // b * b


def _vmem_capacity_bytes():
    try:
        info = pltpu.get_tpu_info()
        cap = getattr(info, "vmem_capacity_bytes", None)
        if cap:
            return int(cap)
    except Exception:
        pass
    return 64 << 20  # conservative fallback: v7x per-TensorCore VMEM


@partial(jax.jit, static_argnames=("shrink_fac",))
def downsample_block_small(x, weight, bias, shrink_fac=4):
    """x: (N, C_in, H, W) f32 NCHW; weight: (C_out, C_in, s, s); bias: (C_out,)."""
    N, Cin, H, W = x.shape
    s = shrink_fac
    Ho, Wo = H // s, W // s                  # PyTorch floors on non-divisible H/W
    Cout = weight.shape[0]
    K = Cin * s * s
    M = Ho * Wo                              # output pixels per image

    x = x[:, :, : Ho * s, : Wo * s]          # no-op slice when H, W divide evenly

    # --- per-image patch columns (K, M): one column per output pixel ---------
    # TODO(synk): this transpose is one extra HBM read+write of x.  The patch
    # gather of a stride==kernel conv is an inherent relayout; pushing it into
    # the kernel would put the tiny (s, s) within-patch dims on the sublane /
    # lane axes (lane-sparse DMA + shaky in-kernel cross-lane relayouts for
    # sub-native sizes).  The clean fix is upstream: a channel-last /
    # pre-gathered producer layout, at which point this line disappears.
    patches = (
        x.reshape(N, Cin, Ho, s, Wo, s)
        .transpose(0, 1, 3, 5, 2, 4)          # (N, Cin, s, s, Ho, Wo)
        .reshape(N, K, M)
        .astype(jnp.float32)
    )

    # --- augmented weight: pool row + conv rows, resident in VMEM ------------
    w_conv = weight.reshape(Cout, K).astype(jnp.float32)
    pool_row = jnp.zeros((1, K), jnp.float32).at[0, : s * s].set(1.0 / (s * s))
    w_aug = jnp.concatenate([pool_row, w_conv], axis=0)              # (1+Cout, K)
    b_col = bias.astype(jnp.float32).reshape(Cout, 1)

    # --- M tile: lane-dense, sized from the per-generation VMEM budget -------
    vmem_cap = _vmem_capacity_bytes()
    tile_budget = min(24 << 20, vmem_cap // 4)       # ~16 MiB (v7x) / 24 MiB (v5e/v6e)
    bytes_per_col = (K + 1 + Cout) * 4               # patch + output column, f32
    cap_cols = max(128, (tile_budget // (2 * bytes_per_col)) // 128 * 128)
    if M <= cap_cols and M % 128 != 0:
        tm = M                                       # block == full dim (always legal)
    else:
        tm = min(cap_cols, _round_up(M, 128))        # lane-dense multiple of 128
    # keep >= 4 total grid steps when possible (v7x: 2 TCs + >=2 pipelined iters)
    while tm % 128 == 0 and tm > 128 and N * pl.cdiv(M, tm) < 4:
        tm = max(128, (tm // 2) // 128 * 128)

    grid = (N, pl.cdiv(M, tm))

    # --- scoped-VMEM budget, clamped to the chip's physical VMEM -------------
    vmem_need = (2 * K * tm * 4                      # double-buffered patch tile
                 + 2 * (1 + Cout) * tm * 4           # double-buffered output tile
                 + 2 * (1 + Cout) * K * 4            # resident augmented weight
                 + 2 * Cout * 4)                     # bias
    vmem_limit = int(min(vmem_cap * 7 // 8, max(32 << 20, 2 * vmem_need)))

    out = pl.pallas_call(
        _down_kernel,
        out_shape=jax.ShapeDtypeStruct((N, 1 + Cout, M), jnp.float32),
        grid_spec=pltpu.PrefetchScalarGridSpec(
            num_scalar_prefetch=0,
            grid=grid,
            in_specs=[
                pl.BlockSpec((1, K, tm), lambda n, i: (n, 0, i)),     # patch tile
                pl.BlockSpec((1 + Cout, K), lambda n, i: (0, 0)),     # weight (resident)
                pl.BlockSpec((Cout, 1), lambda n, i: (0, 0)),         # bias column
            ],
            out_specs=pl.BlockSpec((1, 1 + Cout, tm), lambda n, i: (n, 0, i)),
        ),
        compiler_params=pltpu.CompilerParams(
            dimension_semantics=("parallel", "parallel"),
            vmem_limit_bytes=vmem_limit,
        ),
    )(patches, w_aug, b_col)

    # (N, 1+Cout, Ho*Wo) -> (N, 1+Cout, Ho, Wo): FREE reshape, no transpose.
    return out.reshape(N, 1 + Cout, Ho, Wo)


def _reference(x, weight, bias, s):
    """Pure-JAX reference (lax conv + reduce_window avg pool), NCHW, full f32."""
    conv = jax.lax.conv_general_dilated(
        x, weight, window_strides=(s, s), padding="VALID",
        dimension_numbers=("NCHW", "OIHW", "NCHW"),
        precision=jax.lax.Precision.HIGHEST,
    ) + bias.reshape(1, -1, 1, 1)
    learned = conv * jax.nn.sigmoid(conv)
    mask = x[:, 0:1, :, :]
    skip = jax.lax.reduce_window(
        mask, 0.0, jax.lax.add, (1, 1, s, s), (1, 1, s, s), "VALID"
    ) / (s * s)
    return jnp.concatenate([skip, learned], axis=1)


if __name__ == "__main__":
    N, Cin, H, W = 2, 4, 16, 16
    Cout, s = 8, 4

    key = jax.random.PRNGKey(0)
    kx, kw, kb = jax.random.split(key, 3)

    x = jax.random.normal(kx, (N, Cin, H, W), dtype=jnp.float32)
    # deterministic synthetic parameters (Conv2d(in=Cin, out=Cout, k=s, stride=s))
    fan_in = Cin * s * s
    weight = jax.random.normal(kw, (Cout, Cin, s, s), dtype=jnp.float32) / jnp.sqrt(fan_in)
    bias = jax.random.normal(kb, (Cout,), dtype=jnp.float32) * 0.1

    out = downsample_block_small(x, weight, bias, shrink_fac=s)
    out = jax.block_until_ready(out)

    ref = _reference(x, weight, bias, s)
    assert out.shape == (N, 1 + Cout, H // s, W // s), out.shape
    err = float(jnp.max(jnp.abs(out - ref)))
    # tolerance accounts for MXU f32 multi-pass rounding on the fused matmul
    assert err < 1e-4, err

    print("KERNEL_OK")
</pallas_src>

<mosaic_0001>
module attributes {stable_mosaic.version = 11 : i64} {
  func.func @_down_kernel(%arg0: i32, %arg1: i32, %arg2: memref<1x64x16xf32, #tpu.memory_space<vmem>>, %arg3: memref<9x64xf32, #tpu.memory_space<vmem>>, %arg4: memref<8x1xf32, #tpu.memory_space<vmem>>, %arg5: memref<1x9x16xf32, #tpu.memory_space<vmem>>) attributes {dimension_semantics = [#tpu.dimension_semantics<parallel>, #tpu.dimension_semantics<parallel>], iteration_bounds = array<i64: 2, 1>, scalar_prefetch = 0 : i64, scratch_operands = 0 : i64, tpu.core_type = #tpu.core_type<tc>, window_params = [{transform_indices = @transform_0, window_bounds = array<i64: 1, 64, 16>}, {pipeline_mode = #tpu.pipeline_mode<synchronous>, transform_indices = @transform_1, window_bounds = array<i64: 9, 64>}, {pipeline_mode = #tpu.pipeline_mode<synchronous>, transform_indices = @transform_2, window_bounds = array<i64: 8, 1>}, {transform_indices = @transform_3, window_bounds = array<i64: 1, 9, 16>}]} {
    %c0 = arith.constant 0 : index
    %c0_0 = arith.constant 0 : index
    %0 = vector.load %arg3[%c0, %c0_0] : memref<9x64xf32, #tpu.memory_space<vmem>>, vector<9x64xf32>
    %c0_1 = arith.constant 0 : index
    %c0_2 = arith.constant 0 : index
    %c0_3 = arith.constant 0 : index
    %1 = vector.load %arg2[%c0_1, %c0_2, %c0_3] : memref<1x64x16xf32, #tpu.memory_space<vmem>>, vector<1x64x16xf32>
    %2 = vector.shape_cast %1 : vector<1x64x16xf32> to vector<64x16xf32>
    %cst = arith.constant dense<0.000000e+00> : vector<9x16xf32>
    %3 = tpu.matmul %0, %2, %cst {dimension_numbers = #tpu.dot_dimension_numbers<[1], [0], [0], [1], [0, 0, 1, 1], [], []>} : vector<9x64xf32>, vector<64x16xf32>, vector<9x16xf32> -> vector<9x16xf32>
    %4 = vector.extract_strided_slice %3 {offsets = [0, 0], sizes = [1, 16], strides = [1, 1]} : vector<9x16xf32> to vector<1x16xf32>
    %c0_4 = arith.constant 0 : index
    %c0_5 = arith.constant 0 : index
    %c0_6 = arith.constant 0 : index
    %5 = vector.load %arg5[%c0_4, %c0_5, %c0_6] : memref<1x9x16xf32, #tpu.memory_space<vmem>>, vector<1x1x16xf32>
    %6 = vector.shape_cast %5 : vector<1x1x16xf32> to vector<1x16xf32>
    %7 = vector.shape_cast %4 : vector<1x16xf32> to vector<1x1x16xf32>
    tpu.vector_store %arg5[%c0_4, %c0_5, %c0_6], %7 {strides = array<i32>} : memref<1x9x16xf32, #tpu.memory_space<vmem>>, vector<1x1x16xf32>,
    %8 = vector.extract_strided_slice %3 {offsets = [1, 0], sizes = [8, 16], strides = [1, 1]} : vector<9x16xf32> to vector<8x16xf32>
    %c0_7 = arith.constant 0 : index
    %c0_8 = arith.constant 0 : index
    %9 = vector.load %arg4[%c0_7, %c0_8] : memref<8x1xf32, #tpu.memory_space<vmem>>, vector<8x1xf32>
    %10 = vector.broadcast %9 : vector<8x1xf32> to vector<8x16xf32>
    %11 = arith.addf %8, %10 : vector<8x16xf32>
    %12 = arith.negf %11 : vector<8x16xf32>
    %13 = math.exp %12 : vector<8x16xf32>
    %cst_9 = arith.constant 1.000000e+00 : f32
    %14 = vector.broadcast %cst_9 : f32 to vector<8x16xf32>
    %15 = arith.addf %14, %13 : vector<8x16xf32>
    %16 = arith.divf %14, %15 : vector<8x16xf32>
    %17 = arith.mulf %11, %16 : vector<8x16xf32>
    %c0_10 = arith.constant 0 : index
    %c1 = arith.constant 1 : index
    %c0_11 = arith.constant 0 : index
    %18 = vector.load %arg5[%c0_10, %c1, %c0_11] : memref<1x9x16xf32, #tpu.memory_space<vmem>>, vector<1x8x16xf32>
    %19 = vector.shape_cast %18 : vector<1x8x16xf32> to vector<8x16xf32>
    %20 = vector.shape_cast %17 : vector<8x16xf32> to vector<1x8x16xf32>
    tpu.vector_store %arg5[%c0_10, %c1, %c0_11], %20 {strides = array<i32>} : memref<1x9x16xf32, #tpu.memory_space<vmem>>, vector<1x8x16xf32>,
    return
  }
  func.func @transform_0(%arg0: i32, %arg1: i32) -> (i32, i32, i32) {
    %c0_i32 = arith.constant 0 : i32
    %c0_i32_0 = arith.constant 0 : i32
    return %arg0, %c0_i32, %arg1 : i32, i32, i32
  }
  func.func @transform_1(%arg0: i32, %arg1: i32) -> (i32, i32) {
    %c0_i32 = arith.constant 0 : i32
    %c0_i32_0 = arith.constant 0 : i32
    %c0_i32_1 = arith.constant 0 : i32
    return %c0_i32, %c0_i32_0 : i32, i32
  }
  func.func @transform_2(%arg0: i32, %arg1: i32) -> (i32, i32) {
    %c0_i32 = arith.constant 0 : i32
    %c0_i32_0 = arith.constant 0 : i32
    %c0_i32_1 = arith.constant 0 : i32
    return %c0_i32, %c0_i32_0 : i32, i32
  }
  func.func @transform_3(%arg0: i32, %arg1: i32) -> (i32, i32, i32) {
    %c0_i32 = arith.constant 0 : i32
    %c0_i32_0 = arith.constant 0 : i32
    return %arg0, %c0_i32, %arg1 : i32, i32, i32
  }
}

</mosaic_0001>

<bundles_post_ra>
// kernel: downsample_block_small.1
= control target key start
LH: loop header
LB: loop body
LE: loop exit
PB: predicated region body
PF: predicated region fallthrough
CT: control target
= control target key end

     0   :  { %s530_s12 = smov 0   ;;  %s532_s13 = smov 0   ;;  %s580_s0 = inlined_call_operand.vmem [shape: f32[2,64,16], index: 0, kind: input, shape index: {}]   ;;  %s581_s1 = inlined_call_operand.vmem [shape: f32[9,64], index: 1, kind: input, shape index: {}]   ;;  %s582_s2 = inlined_call_operand.vmem [shape: f32[8,1], index: 2, kind: input, shape index: {}]   ;;  %s583_s3 = inlined_call_operand.vmem [shape: f32[2,9,16], index: 3, kind: output, shape index: {}]  }
   0x1   :  { %s534_s14 = smov 0  }
   0x2 LB: > { %s25_s15 = sadd.s32 1, %s503_s13  ;;  %p409_p0 = scmp.ge.s32.totalorder %s507_s14, 1  ;;  %s507_s14 = sphi %s534_s14, %s13_s14   ;;  %s503_s13 = sphi %s532_s13, %s585_s13   ;;  %s499_s12 = sphi %s530_s12, %s584_s12  }
   0x3   : > { %p27_p1 = scmp.ge.s32.totalorder %s25_s15, 2  ;;  %p156_p2 = scmp.lt.s32.totalorder %s507_s14, 3 }
   0x5   : > { %s587_s15 = smov (%p27_p1, %s25_s15), 0  ;;  %p157_p3 = pnand %p409_p0, %p156_p2 }
   0x6   : > { %p186_p4 = scmp.lt.s32.totalorder (!%p157_p3), %s499_s12, 1 }
   0x7   : > { %160 = sbr.rel (%p157_p3) target bundleno = 264 (0x108), region = 32 }
   0xc   : > { %v202_v0 = vld [vmem:[%s581_s1] sm:$0xff]  ;;  %vm212_vm0 = vcmask 523264   ;;  %v509_v1 = vmov 0   ;;  %s589_s12 = smov (!%p186_p4, %s499_s12), 1  ;;  %v203_v11 = vld [vmem:[%s581_s1 + $0x8] sm:$0x1] }
   0xd   : > { %448 = vmatprep.mubr.msk.f32.mxu0 %vm212_vm0, %v202_v0  ;;  %476 = vset.pattern.permute.xlu0 %v509_v1  ;;  %v296_v2 = vld [vmem:[%s582_s2] sm:$0xff]  ;;  %s420_s20 = sshll.u32 %s589_s12, 6  ;;  %s421_s26 = sshll.u32 %s589_s12, 4  ;;  %vm294_vm1 = vcmask 122880   ;;  %vm319_vm2 = vcmask 130049  }
   0xe   : > { %299 = vperm.xlu0 %476, %v296_v2   ;;  %s193_s23 = scalar_lea.vmem %s580_s0, %s420_s20  ;;  %s201_s29 = scalar_lea.vmem %s583_s3, %s421_s26 }
   0xf   : > { %v211_v3 = vld [vmem:[%s193_s23 + $0x38] sm:$0xff]  ;;  %v210_v4 = vld [vmem:[%s193_s23 + $0x30] sm:$0xff]  ;;  %v209_v5 = vld [vmem:[%s193_s23 + $0x28] sm:$0xff] }
  0x10   : > { %432 = vmatprep.subr.mxu0 %v211_v3  ;;  %v208_v6 = vld [vmem:[%s193_s23 + $0x20] sm:$0xff]  ;;  %v207_v7 = vld [vmem:[%s193_s23 + $0x18] sm:$0xff]  ;;  %v206_v8 = vld [vmem:[%s193_s23 + $0x10] sm:$0xff] }
  0x11   : > { %433 = vmatpush3.msra.mxu0 %v211_v3  ;;  %v205_v9 = vld [vmem:[%s193_s23 + $0x8] sm:$0xff]  ;;  %v204_v10 = vld [vmem:[%s193_s23] sm:$0xff] }
  0x12   : > { %434 = vmatprep.subr.mxu0 %v210_v4 }
  0x13   : > { %435 = vmatpush3.msra.mxu0 %v210_v4 }
  0x14   : > { %436 = vmatprep.subr.mxu0 %v209_v5 }
  0x15   : > { %437 = vmatpush3.msra.mxu0 %v209_v5 }
  0x16   : > { %438 = vmatprep.subr.mxu0 %v208_v6 }
  0x17   : > { %439 = vmatpush3.msra.mxu0 %v208_v6 }
  0x18   : > { %440 = vmatprep.subr.mxu0 %v207_v7 }
  0x19   : > { %441 = vmatpush3.msra.mxu0 %v207_v7 }
  0x1a   : > { %442 = vmatprep.subr.mxu0 %v206_v8 }
  0x1b   : > { %443 = vmatpush3.msra.mxu0 %v206_v8 }
  0x1c   : > { %444 = vmatprep.subr.mxu0 %v205_v9 }
  0x1d   : > { %445 = vmatpush3.msra.mxu0 %v205_v9 }
  0x1e   : > { %446 = vmatprep.subr.mxu0 %v204_v10 }
  0x1f   : > { %447 = vmatpush3.msra.mxu0 %v204_v10 }
  0x20   : > { %449 = vmatmul.mubr.msk.f32.vlgmr.msra.gmra.mxu0 %vm212_vm0, %v203_v11 }
  0x89   : > { %v300_v12 = vpop.permute.xlu0 %299 }
  0x8a   : > { %v301_v13 = vrot.slane %v300_v12, 7 }
  0xe0   : > { %v450_v14 = vpop.f32.mrf.mxu0 }
  0xe1   : > { %v304_v15 = vadd.f32 %v450_v14, %v301_v13 }
  0xe2   : > { %v285_v16 = vpop.f32.mrf.mxu0 }
  0xe3   : > { %v417_v17 = vmul.f32 -1.442695, %v304_v15  ;;  %295 = vst.msk [vmem:[%s201_s29] sm:$0x1] %vm294_vm1, %v285_v16  ;;  %v303_v18 = vadd.f32 %v301_v13, %v285_v16 }
  0xe5   : > { %477 = vpow2.f32 %v417_v17  ;;  %v416_v19 = vmul.f32 -1.442695, %v303_v18 }
  0xe7   : > { %479 = vpow2.f32 %v416_v19 }
  0xf2   : > { %v478_v20 = vpop.eup %477 }
  0xf3   : > { %v312_v21 = vadd.f32 1.0, %v478_v20 }
  0xf4   : > { %v480_v22 = vpop.eup %479 }
  0xf5   : > { %481 = vrcp.f32 %v312_v21  ;;  %v311_v23 = vadd.f32 1.0, %v480_v22 }
  0xf7   : > { %483 = vrcp.f32 %v311_v23 }
 0x102   : > { %v482_v24 = vpop.eup %481 }
 0x103   : > { %v318_v25 = vmul.f32 %v482_v24, %v304_v15 }
 0x104   : > { %v484_v26 = vpop.eup %483 }
 0x105   : > { %v317_v27 = vmul.f32 %v484_v26, %v303_v18  ;;  %321 = vst.msk [vmem:[%s201_s29 + $0x8] sm:$0x1] %vm294_vm1, %v318_v25 }
 0x107   : > { %320 = vst.msk [vmem:[%s201_s29] sm:$0xfe] %vm319_vm2, %v317_v27 }
 0x108 PF: > { %s13_s14 = sadd.s32 1, %s507_s14   ;;  %s584_s12 = smov %s503_s13 }
 0x109   : > { %p10_p5 = scmp.ge.s32.totalorder %s13_s14, 4   ;;  %s585_s13 = smov %s587_s15 }
 0x10b   :  { %12 = sbr.rel (!%p10_p5) target bundleno = 2 (0x2), region = 62 }

</bundles_post_ra>
